<compile_context>
chip_gen: v7x
topology: tpu7x:2x2x1
jax: 0.10.0
libtpu: 0.0.40
codegen_flags: <defaults>
</compile_context>

<pallas_src>
import jax
import jax.numpy as jnp
from jax.experimental import pallas as pl
from jax.experimental.pallas import tpu as pltpu

# ----------------------------- model dims -----------------------------------
IN_DIM = 32           # input_shape = (32,)  (SimpleBody is an MLP body)
FEAT = 128            # SimpleBody fc1 output / feature_size()
HID = 512             # DQN.fc1 hidden
NUM_ACTIONS = 4
BATCH = 2             # act()-sized example batch


# ----------------------------- hw heuristics ---------------------------------
def _round_up(n, m):
    return ((n + m - 1) // m) * m


def _tpu_generation():
    """Best-effort TPU generation. 5 => v5e-class (no bf16 VPU, 128-wide MXU);
    >=6 => bf16 VALU + 256-wide MXU; >=7 => 2 TensorCores per chip."""
    try:
        kind = jax.devices()[0].device_kind.lower()
    except Exception:
        return 5
    for g in (7, 6, 5, 4, 3, 2):
        if f"v{g}" in kind or f"{g}x" in kind or f"{g}e" in kind or f"{g}p" in kind:
            return g
    return 5  # unknown -> conservative (f32 elementwise, 128-row tiles)


def _choose_tile_b(B):
    """Adaptive batch tile: bf16 sublane multiple (16) for tiny act() batches,
    up to 256 rows on v6e/v7x to fill the MXU, and >= 2 grid steps on v7x."""
    gen = _tpu_generation()
    max_tile = 256 if gen >= 6 else 128
    tile = min(_round_up(max(B, 1), 16), max_tile)
    if gen >= 7 and B > 16:
        # v7x: 2 TensorCores split the "parallel" batch grid -> keep >= 2 tiles.
        tile = min(tile, _round_up(pl.cdiv(B, 2), 16))
    return tile


# ------------------------------ kernel ---------------------------------------
def dqn_kernel(x_ref, wb_ref, bb_ref, w1_ref, b1_ref, w2_ref, b2_ref, out_ref):
    """relu(x@Wb+bb) -> relu(.@W1+b1) -> .@W2+b2 on one (TILE_B, IN_DIM) tile.

    Weights/biases are VMEM-resident across the whole batch grid (constant
    index_map). x arrives f32 and is cast to bf16 here; matmuls are bf16 with
    f32 MXU accumulation; bias-add/ReLU run in the bias dtype (bf16 on v6e/v7x,
    f32 on v5e)."""
    cd = wb_ref.dtype      # bf16 compute dtype for the MXU
    ew = bb_ref.dtype      # elementwise dtype (generation-gated in prepare_params)

    # SimpleBody: relu(x @ Wb + bb)
    h = jnp.dot(x_ref[...].astype(cd), wb_ref[...],
                preferred_element_type=jnp.float32)
    h = jnp.maximum(h.astype(ew) + bb_ref[...], 0).astype(cd)

    # fc1 + relu
    h1 = jnp.dot(h, w1_ref[...], preferred_element_type=jnp.float32)
    h1 = jnp.maximum(h1.astype(ew) + b1_ref[...], 0).astype(cd)

    # fc2: narrow (TILE_B, NUM_ACTIONS) store -- 32x fewer writeback bytes than
    # a 128-lane padded slab.
    q = jnp.dot(h1, w2_ref[...], preferred_element_type=jnp.float32) + b2_ref[...]
    out_ref[...] = q.astype(out_ref.dtype)


# ------------------------- one-time weight preparation ------------------------
def prepare_params(params, compute_dtype=jnp.bfloat16, elementwise_dtype=None):
    """Hoisted out of the hot path: transpose PyTorch (out,in) weights to (in,out),
    cast weights to bf16. Biases go to the elementwise dtype (bf16 on v6e/v7x,
    f32 on v5e/older); the final-layer bias stays f32 (output is f32)."""
    if elementwise_dtype is None:
        elementwise_dtype = jnp.bfloat16 if _tpu_generation() >= 6 else jnp.float32

    def t(w):
        return jnp.asarray(w, jnp.float32).T.astype(compute_dtype)

    def b(v, dt):
        return jnp.asarray(v, jnp.float32).reshape(1, -1).astype(dt)

    return {
        "wb": t(params["w_body"]), "bb": b(params["b_body"], elementwise_dtype),
        "w1": t(params["w_fc1"]),  "b1": b(params["b_fc1"], elementwise_dtype),
        "w2": t(params["w_fc2"]),  "b2": b(params["b_fc2"], jnp.float32),
    }


# ------------------------------ forward wrapper --------------------------------
@jax.jit
def dqn_forward(x, prep):
    """x: (B, IN_DIM) float32; prep: output of prepare_params(). Returns (B, A) f32."""
    B = x.shape[0]
    tile_b = _choose_tile_b(B)
    n_tiles = pl.cdiv(B, tile_b)
    Bp = n_tiles * tile_b

    # Fused row pad only when needed; no zeros+dynamic_update_slice round-trip,
    # no wrapper-side dtype cast (cast happens in-kernel).
    xp = x if Bp == B else jnp.pad(x, ((0, Bp - B), (0, 0)))

    const = lambda i: (0, 0)   # weights/biases: same block every step -> stay in VMEM
    # NOTE: pipeline_mode=pl.Buffered(1) on the constant specs would shave ~0.26 MiB
    # of unused double buffers; skipped as immaterial for this footprint.
    out = pl.pallas_call(
        dqn_kernel,
        out_shape=jax.ShapeDtypeStruct((Bp, NUM_ACTIONS), jnp.float32),
        grid=(n_tiles,),
        in_specs=[
            pl.BlockSpec((tile_b, IN_DIM), lambda i: (i, 0)),
            pl.BlockSpec((IN_DIM, FEAT), const),
            pl.BlockSpec((1, FEAT), const),
            pl.BlockSpec((FEAT, HID), const),
            pl.BlockSpec((1, HID), const),
            pl.BlockSpec((HID, NUM_ACTIONS), const),
            pl.BlockSpec((1, NUM_ACTIONS), const),
        ],
        out_specs=pl.BlockSpec((tile_b, NUM_ACTIONS), lambda i: (i, 0)),
        compiler_params=pltpu.CompilerParams(
            dimension_semantics=("parallel",)),   # disjoint batch tiles (v7x: 2 TCs)
    )(xp, prep["wb"], prep["bb"], prep["w1"], prep["b1"], prep["w2"], prep["b2"])

    return out if Bp == B else out[:B]


# --------------------------- deterministic init -------------------------------
def init_params(key):
    """PyTorch-style Linear shapes (out_features, in_features), uniform init."""
    keys = jax.random.split(key, 6)

    def lin(kw, kb, fan_in, fan_out):
        bound = 1.0 / jnp.sqrt(jnp.float32(fan_in))
        w = jax.random.uniform(kw, (fan_out, fan_in), jnp.float32, -bound, bound)
        b = jax.random.uniform(kb, (fan_out,), jnp.float32, -bound, bound)
        return w, b

    p = {}
    p["w_body"], p["b_body"] = lin(keys[0], keys[1], IN_DIM, FEAT)
    p["w_fc1"], p["b_fc1"] = lin(keys[2], keys[3], FEAT, HID)
    p["w_fc2"], p["b_fc2"] = lin(keys[4], keys[5], HID, NUM_ACTIONS)
    return p


# --------------------------- references ----------------------------------------
def reference_forward_f32(x, p):
    """Pure-f32 PyTorch-convention reference."""
    h = jax.nn.relu(x @ p["w_body"].T + p["b_body"])
    h1 = jax.nn.relu(h @ p["w_fc1"].T + p["b_fc1"])
    return h1 @ p["w_fc2"].T + p["b_fc2"]


def reference_forward_matched(x, prep):
    """Pure-JAX reference using the kernel's exact dtype recipe (bf16 weights,
    f32 MXU accumulation, generation-dependent elementwise dtype)."""
    cd = prep["wb"].dtype
    ew = prep["bb"].dtype
    h = jnp.dot(x.astype(cd), prep["wb"], preferred_element_type=jnp.float32)
    h = jnp.maximum(h.astype(ew) + prep["bb"], 0).astype(cd)
    h1 = jnp.dot(h, prep["w1"], preferred_element_type=jnp.float32)
    h1 = jnp.maximum(h1.astype(ew) + prep["b1"], 0).astype(cd)
    q = jnp.dot(h1, prep["w2"], preferred_element_type=jnp.float32) + prep["b2"]
    return q.astype(jnp.float32)


if __name__ == "__main__":
    key = jax.random.PRNGKey(0)
    kx, kp, kx2 = jax.random.split(key, 3)
    params = init_params(kp)
    prep = prepare_params(params)          # one-time; not in the steady-state path

    # act()-sized batch (B=2): single small (16-row) tile, no wrapper materialization.
    x_small = jax.random.normal(kx, (BATCH, IN_DIM), jnp.float32)
    out_small = jax.block_until_ready(dqn_forward(x_small, prep))
    assert out_small.shape == (BATCH, NUM_ACTIONS)
    assert jnp.allclose(out_small, reference_forward_matched(x_small, prep),
                        atol=1e-2, rtol=1e-2), "small-batch mismatch vs matched reference"
    assert jnp.allclose(out_small, reference_forward_f32(x_small, params),
                        atol=5e-2, rtol=5e-2), "small-batch mismatch vs f32 reference"

    # replay-sized batch (B=300): exercises multi-tile grid + row-padding path.
    B_big = 300
    x_big = jax.random.normal(kx2, (B_big, IN_DIM), jnp.float32)
    out_big = jax.block_until_ready(dqn_forward(x_big, prep))
    assert out_big.shape == (B_big, NUM_ACTIONS)
    assert jnp.allclose(out_big, reference_forward_matched(x_big, prep),
                        atol=1e-2, rtol=1e-2), "large-batch mismatch vs matched reference"

    # TODO(synk): noisy=True (NoisyLinear + sample_noise) path not implemented.
    print("KERNEL_OK")
</pallas_src>

<mosaic_0001>
module attributes {stable_mosaic.version = 11 : i64} {
  func.func @dqn_kernel(%arg0: i32, %arg1: memref<16x32xf32, #tpu.memory_space<vmem>>, %arg2: memref<32x128xbf16, #tpu.memory_space<vmem>>, %arg3: memref<1x128xf32, #tpu.memory_space<vmem>>, %arg4: memref<128x512xbf16, #tpu.memory_space<vmem>>, %arg5: memref<1x512xf32, #tpu.memory_space<vmem>>, %arg6: memref<512x4xbf16, #tpu.memory_space<vmem>>, %arg7: memref<1x4xf32, #tpu.memory_space<vmem>>, %arg8: memref<16x4xf32, #tpu.memory_space<vmem>>) attributes {dimension_semantics = [#tpu.dimension_semantics<parallel>], iteration_bounds = array<i64: 1>, scalar_prefetch = 0 : i64, scratch_operands = 0 : i64, tpu.core_type = #tpu.core_type<tc>, window_params = [{transform_indices = @transform_0, window_bounds = array<i64: 16, 32>}, {pipeline_mode = #tpu.pipeline_mode<synchronous>, transform_indices = @transform_1, window_bounds = array<i64: 32, 128>}, {pipeline_mode = #tpu.pipeline_mode<synchronous>, transform_indices = @transform_2, window_bounds = array<i64: 1, 128>}, {pipeline_mode = #tpu.pipeline_mode<synchronous>, transform_indices = @transform_3, window_bounds = array<i64: 128, 512>}, {pipeline_mode = #tpu.pipeline_mode<synchronous>, transform_indices = @transform_4, window_bounds = array<i64: 1, 512>}, {pipeline_mode = #tpu.pipeline_mode<synchronous>, transform_indices = @transform_5, window_bounds = array<i64: 512, 4>}, {pipeline_mode = #tpu.pipeline_mode<synchronous>, transform_indices = @transform_6, window_bounds = array<i64: 1, 4>}, {transform_indices = @transform_7, window_bounds = array<i64: 16, 4>}]} {
    %c0 = arith.constant 0 : index
    %c0_0 = arith.constant 0 : index
    %0 = vector.load %arg1[%c0, %c0_0] : memref<16x32xf32, #tpu.memory_space<vmem>>, vector<16x32xf32>
    %1 = arith.truncf %0 : vector<16x32xf32> to vector<16x32xbf16>
    %c0_1 = arith.constant 0 : index
    %c0_2 = arith.constant 0 : index
    %2 = vector.load %arg2[%c0_1, %c0_2] : memref<32x128xbf16, #tpu.memory_space<vmem>>, vector<32x128xbf16>
    %cst = arith.constant dense<0.000000e+00> : vector<16x128xf32>
    %3 = tpu.matmul %1, %2, %cst {dimension_numbers = #tpu.dot_dimension_numbers<[1], [0], [0], [1], [0, 0, 1, 1], [], []>} : vector<16x32xbf16>, vector<32x128xbf16>, vector<16x128xf32> -> vector<16x128xf32>
    %c0_3 = arith.constant 0 : index
    %c0_4 = arith.constant 0 : index
    %4 = vector.load %arg3[%c0_3, %c0_4] : memref<1x128xf32, #tpu.memory_space<vmem>>, vector<1x128xf32>
    %5 = vector.broadcast %4 : vector<1x128xf32> to vector<16x128xf32>
    %6 = arith.addf %3, %5 : vector<16x128xf32>
    %cst_5 = arith.constant 0.000000e+00 : f32
    %7 = vector.broadcast %cst_5 : f32 to vector<16x128xf32>
    %8 = arith.maximumf %6, %7 : vector<16x128xf32>
    %9 = arith.truncf %8 : vector<16x128xf32> to vector<16x128xbf16>
    %c0_6 = arith.constant 0 : index
    %c0_7 = arith.constant 0 : index
    %10 = vector.load %arg4[%c0_6, %c0_7] : memref<128x512xbf16, #tpu.memory_space<vmem>>, vector<128x512xbf16>
    %cst_8 = arith.constant dense<0.000000e+00> : vector<16x512xf32>
    %11 = tpu.matmul %9, %10, %cst_8 {dimension_numbers = #tpu.dot_dimension_numbers<[1], [0], [0], [1], [0, 0, 1, 1], [], []>} : vector<16x128xbf16>, vector<128x512xbf16>, vector<16x512xf32> -> vector<16x512xf32>
    %c0_9 = arith.constant 0 : index
    %c0_10 = arith.constant 0 : index
    %12 = vector.load %arg5[%c0_9, %c0_10] : memref<1x512xf32, #tpu.memory_space<vmem>>, vector<1x512xf32>
    %13 = vector.broadcast %12 : vector<1x512xf32> to vector<16x512xf32>
    %14 = arith.addf %11, %13 : vector<16x512xf32>
    %cst_11 = arith.constant 0.000000e+00 : f32
    %15 = vector.broadcast %cst_11 : f32 to vector<16x512xf32>
    %16 = arith.maximumf %14, %15 : vector<16x512xf32>
    %17 = arith.truncf %16 : vector<16x512xf32> to vector<16x512xbf16>
    %c0_12 = arith.constant 0 : index
    %c0_13 = arith.constant 0 : index
    %18 = vector.load %arg6[%c0_12, %c0_13] : memref<512x4xbf16, #tpu.memory_space<vmem>>, vector<512x4xbf16>
    %cst_14 = arith.constant dense<0.000000e+00> : vector<16x4xf32>
    %19 = tpu.matmul %17, %18, %cst_14 {dimension_numbers = #tpu.dot_dimension_numbers<[1], [0], [0], [1], [0, 0, 1, 1], [], []>} : vector<16x512xbf16>, vector<512x4xbf16>, vector<16x4xf32> -> vector<16x4xf32>
    %c0_15 = arith.constant 0 : index
    %c0_16 = arith.constant 0 : index
    %20 = vector.load %arg7[%c0_15, %c0_16] : memref<1x4xf32, #tpu.memory_space<vmem>>, vector<1x4xf32>
    %21 = vector.broadcast %20 : vector<1x4xf32> to vector<16x4xf32>
    %22 = arith.addf %19, %21 : vector<16x4xf32>
    %c0_17 = arith.constant 0 : index
    %c0_18 = arith.constant 0 : index
    %23 = vector.load %arg8[%c0_17, %c0_18] : memref<16x4xf32, #tpu.memory_space<vmem>>, vector<16x4xf32>
    tpu.vector_store %arg8[%c0_17, %c0_18], %22 {strides = array<i32>} : memref<16x4xf32, #tpu.memory_space<vmem>>, vector<16x4xf32>,
    return
  }
  func.func @transform_0(%arg0: i32) -> (i32, i32) {
    %c0_i32 = arith.constant 0 : i32
    %c0_i32_0 = arith.constant 0 : i32
    return %arg0, %c0_i32 : i32, i32
  }
  func.func @transform_1(%arg0: i32) -> (i32, i32) {
    %c0_i32 = arith.constant 0 : i32
    %c0_i32_0 = arith.constant 0 : i32
    %c0_i32_1 = arith.constant 0 : i32
    return %c0_i32, %c0_i32_0 : i32, i32
  }
  func.func @transform_2(%arg0: i32) -> (i32, i32) {
    %c0_i32 = arith.constant 0 : i32
    %c0_i32_0 = arith.constant 0 : i32
    %c0_i32_1 = arith.constant 0 : i32
    return %c0_i32, %c0_i32_0 : i32, i32
  }
  func.func @transform_3(%arg0: i32) -> (i32, i32) {
    %c0_i32 = arith.constant 0 : i32
    %c0_i32_0 = arith.constant 0 : i32
    %c0_i32_1 = arith.constant 0 : i32
    return %c0_i32, %c0_i32_0 : i32, i32
  }
  func.func @transform_4(%arg0: i32) -> (i32, i32) {
    %c0_i32 = arith.constant 0 : i32
    %c0_i32_0 = arith.constant 0 : i32
    %c0_i32_1 = arith.constant 0 : i32
    return %c0_i32, %c0_i32_0 : i32, i32
  }
  func.func @transform_5(%arg0: i32) -> (i32, i32) {
    %c0_i32 = arith.constant 0 : i32
    %c0_i32_0 = arith.constant 0 : i32
    %c0_i32_1 = arith.constant 0 : i32
    return %c0_i32, %c0_i32_0 : i32, i32
  }
  func.func @transform_6(%arg0: i32) -> (i32, i32) {
    %c0_i32 = arith.constant 0 : i32
    %c0_i32_0 = arith.constant 0 : i32
    %c0_i32_1 = arith.constant 0 : i32
    return %c0_i32, %c0_i32_0 : i32, i32
  }
  func.func @transform_7(%arg0: i32) -> (i32, i32) {
    %c0_i32 = arith.constant 0 : i32
    %c0_i32_0 = arith.constant 0 : i32
    return %arg0, %c0_i32 : i32, i32
  }
}

</mosaic_0001>

<bundles_post_ra>
// kernel: dqn_forward.1
= control target key start
LH: loop header
LB: loop body
LE: loop exit
PB: predicated region body
PF: predicated region fallthrough
CT: control target
= control target key end

     0   :  { %v974_v0 = vmov 0.0   ;;  %vm975_vm0 = vmmov 0   ;;  %vm53_vm1 = vcmask 261120   ;;  %v976_v38 = vmov 0   ;;  %s1236_s1 = inlined_call_operand.vmem [shape: bf16[32,128], index: 1, kind: input, shape index: {}]   ;;  %s1237_s0 = inlined_call_operand.vmem [shape: f32[16,32], index: 0, kind: input, shape index: {}]   ;;  %s1238_s3 = inlined_call_operand.vmem [shape: bf16[128,512], index: 3, kind: input, shape index: {}]   ;;  %s1239_s5 = inlined_call_operand.vmem [shape: bf16[512,4], index: 5, kind: input, shape index: {}]   ;;  %s1240_s2 = inlined_call_operand.vmem [shape: f32[1,128], index: 2, kind: input, shape index: {}]   ;;  %s1241_s4 = inlined_call_operand.vmem [shape: f32[1,512], index: 4, kind: input, shape index: {}]   ;;  %s1242_s6 = inlined_call_operand.vmem [shape: f32[1,4], index: 6, kind: input, shape index: {}]   ;;  %s1243_s7 = inlined_call_operand.vmem [shape: f32[16,4], index: 7, kind: output, shape index: {}]  }
   0x1   :  { %881 = vmatprep.subr.bf16.mxu0 %v974_v0  ;;  %v892_v1 = vld [vmem:[%s1236_s1] sm:$0xff]   ;;  %885 = vmatprep.mubr.msk.bf16.mxu0 %vm975_vm0, %v974_v0  ;;  %v893_v2 = vld [vmem:[%s1236_s1 + $0x8] sm:$0xff]   ;;  %v950_v57 = vld [vmem:[%s1239_s5 + $0x50] sm:$0xff]   ;;  %vm758_vm2 = vcmask 31744  }
   0x2   :  { %882 = vmatpush3.bf16.msra.mxu0 %v892_v1  ;;  %v27_v3 = vld [vmem:[%s1237_s0] sm:$0xff]  ;;  %v28_v4 = vld [vmem:[%s1237_s0 + $0x8] sm:$0xff]  ;;  %347 = vmatprep.mubr.bf16.mxu1 %v976_v38  ;;  %v951_v58 = vld [vmem:[%s1239_s5 + $0xd0] sm:$0xff]  }
   0x3   :  { %883 = vmatprep.subr.bf16.mxu0 %v974_v0  ;;  %v894_v5 = vld [vmem:[%s1238_s3 + $0x4] ss:$16 sps:$4 sm:$0xff]   ;;  %v896_v6 = vld [vmem:[%s1238_s3 + $0x8] ss:$16 sps:$4 sm:$0xff]   ;;  %v898_v7 = vld [vmem:[%s1238_s3 + $0xc] ss:$16 sps:$4 sm:$0xff]   ;;  %v29_v8 = vpack.c.bf16 %v28_v4, %v27_v3 }
   0x4   :  { %315 = vmatprep.subr.bf16.mxu1 %v894_v5  ;;  %v899_v9 = vld [vmem:[%s1238_s3] ss:$16 sps:$4 sm:$0xff]   ;;  %v900_v10 = vld [vmem:[%s1238_s3 + $0x24] ss:$16 sps:$4 sm:$0xff]   ;;  %v904_v11 = vld [vmem:[%s1238_s3 + $0x2c] ss:$16 sps:$4 sm:$0xff]  }
   0x5   :  { %316 = vmatpush1.bf16.msra.mxu1 %v899_v9  ;;  %v905_v12 = vld [vmem:[%s1238_s3 + $0x20] ss:$16 sps:$4 sm:$0xff]   ;;  %v906_v13 = vld [vmem:[%s1238_s3 + $0x44] ss:$16 sps:$4 sm:$0xff]   ;;  %v902_v14 = vld [vmem:[%s1238_s3 + $0x28] ss:$16 sps:$4 sm:$0xff]  }
   0x6   :  { %884 = vmatpush3.bf16.msra.mxu0 %v893_v2  ;;  %317 = vmatprep.subr.bf16.mxu1 %v900_v10  ;;  %v910_v15 = vld [vmem:[%s1238_s3 + $0x4c] ss:$16 sps:$4 sm:$0xff]   ;;  %v911_v16 = vld [vmem:[%s1238_s3 + $0x40] ss:$16 sps:$4 sm:$0xff]   ;;  %v912_v17 = vld [vmem:[%s1238_s3 + $0x64] ss:$16 sps:$4 sm:$0xff]  }
   0x7   :  { %358 = vmatprep.subr.bf16.mxu0 %v898_v7  ;;  %v908_v18 = vld [vmem:[%s1238_s3 + $0x48] ss:$16 sps:$4 sm:$0xff]   ;;  %v916_v19 = vld [vmem:[%s1238_s3 + $0x6c] ss:$16 sps:$4 sm:$0xff]   ;;  %v917_v20 = vld [vmem:[%s1238_s3 + $0x60] ss:$16 sps:$4 sm:$0xff]  }
   0x8   :  { %v918_v21 = vld [vmem:[%s1238_s3 + $0x84] ss:$16 sps:$4 sm:$0xff]   ;;  %v914_v22 = vld [vmem:[%s1238_s3 + $0x68] ss:$16 sps:$4 sm:$0xff]   ;;  %v922_v23 = vld [vmem:[%s1238_s3 + $0x8c] ss:$16 sps:$4 sm:$0xff]  }
   0x9   :  { %886 = vmatmul.mubr.msk.bf16.vlgmr.msra.gmra.mrb[0].mxu0 %vm53_vm1, %v29_v8  ;;  %318 = vmatpush1.bf16.msra.mxu1 %v905_v12  ;;  %v923_v24 = vld [vmem:[%s1238_s3 + $0x80] ss:$16 sps:$4 sm:$0xff]   ;;  %v924_v25 = vld [vmem:[%s1238_s3 + $0xa4] ss:$16 sps:$4 sm:$0xff]   ;;  %v920_v26 = vld [vmem:[%s1238_s3 + $0x88] ss:$16 sps:$4 sm:$0xff]  }
   0xa   :  { %359 = vmatpush1.bf16.msra.mxu0 %v896_v6  ;;  %319 = vmatprep.subr.bf16.mxu1 %v906_v13  ;;  %v928_v27 = vld [vmem:[%s1238_s3 + $0xac] ss:$16 sps:$4 sm:$0xff]   ;;  %v929_v28 = vld [vmem:[%s1238_s3 + $0xa0] ss:$16 sps:$4 sm:$0xff]   ;;  %v926_v29 = vld [vmem:[%s1238_s3 + $0xa8] ss:$16 sps:$4 sm:$0xff]  }
   0xb   :  { %360 = vmatprep.subr.bf16.mxu0 %v904_v11  ;;  %v930_v30 = vld [vmem:[%s1238_s3 + $0xc4] ss:$16 sps:$4 sm:$0xff]   ;;  %v934_v31 = vld [vmem:[%s1238_s3 + $0xcc] ss:$16 sps:$4 sm:$0xff]   ;;  %v932_v32 = vld [vmem:[%s1238_s3 + $0xc8] ss:$16 sps:$4 sm:$0xff]   ;;  %390 = vmatprep.mubr.bf16.mxu0 %v976_v38 }
   0xc   :  { %v935_v33 = vld [vmem:[%s1238_s3 + $0xc0] ss:$16 sps:$4 sm:$0xff]   ;;  %v936_v34 = vld [vmem:[%s1238_s3 + $0xe4] ss:$16 sps:$4 sm:$0xff]   ;;  %v940_v35 = vld [vmem:[%s1238_s3 + $0xec] ss:$16 sps:$4 sm:$0xff]  }
   0xd   :  { %320 = vmatpush1.bf16.msra.mxu1 %v911_v16  ;;  %v938_v36 = vld [vmem:[%s1238_s3 + $0xe8] ss:$16 sps:$4 sm:$0xff]   ;;  %v941_v37 = vld [vmem:[%s1238_s3 + $0xe0] ss:$16 sps:$4 sm:$0xff]  }
   0xe   :  { %361 = vmatpush1.bf16.msra.mxu0 %v902_v14  ;;  %321 = vmatprep.subr.bf16.mxu1 %v912_v17  ;;  %v942_v39 = vld [vmem:[%s1239_s5 + $0x40] sm:$0xff]   ;;  %v946_v53 = vld [vmem:[%s1239_s5 + $0x48] sm:$0xff]   ;;  %v952_v59 = vld [vmem:[%s1239_s5 + $0x10] sm:$0xff]   ;;  %v135_v17 = vlaneseq }
   0xf   :  { %362 = vmatprep.subr.bf16.mxu0 %v910_v15  ;;  %v943_v40 = vld [vmem:[%s1239_s5 + $0xc0] sm:$0xff]   ;;  %v947_v54 = vld [vmem:[%s1239_s5 + $0xc8] sm:$0xff]   ;;  %v953_v60 = vld [vmem:[%s1239_s5 + $0x90] sm:$0xff]  }
  0x10   :  { %v765_v41 = vld [vmem:[%s1240_s2] ss:$0 sm:$0xff]  ;;  %v948_v55 = vld [vmem:[%s1239_s5 + $0x8] sm:$0xff]   ;;  %v954_v61 = vld [vmem:[%s1239_s5 + $0x58] sm:$0xff]  }
  0x11   :  { %322 = vmatpush1.bf16.msra.mxu1 %v917_v20  ;;  %v944_v50 = vld [vmem:[%s1239_s5] sm:$0xff]   ;;  %v949_v56 = vld [vmem:[%s1239_s5 + $0x88] sm:$0xff]   ;;  %v955_v62 = vld [vmem:[%s1239_s5 + $0xd8] sm:$0xff]  }
  0x12   :  { %363 = vmatpush1.bf16.msra.mxu0 %v908_v18  ;;  %323 = vmatprep.subr.bf16.mxu1 %v918_v21  ;;  %v945_v51 = vld [vmem:[%s1239_s5 + $0x80] sm:$0xff]   ;;  %v956_v63 = vld [vmem:[%s1239_s5 + $0x18] sm:$0xff]   ;;  %v962_v5 = vld [vmem:[%s1239_s5 + $0x68] sm:$0xff]   ;;  %v136_v18 = vshrl.u32 %v135_v17, 7 }
  0x13   :  { %364 = vmatprep.subr.bf16.mxu0 %v916_v19  ;;  %v957_v0 = vld [vmem:[%s1239_s5 + $0x98] sm:$0xff]   ;;  %v958_v1 = vld [vmem:[%s1239_s5 + $0x60] sm:$0xff]   ;;  %v963_v6 = vld [vmem:[%s1239_s5 + $0xe8] sm:$0xff]  }
  0x14   :  { %v959_v2 = vld [vmem:[%s1239_s5 + $0xe0] sm:$0xff]   ;;  %v964_v7 = vld [vmem:[%s1239_s5 + $0x28] sm:$0xff]   ;;  %v966_v9 = vld [vmem:[%s1239_s5 + $0x70] sm:$0xff]   ;;  %v137_v19 = vsub.s32 0, %v136_v18  ;;  %v145_v20 = vsub.s32 2, %v136_v18 }
  0x15   :  { %324 = vmatpush1.bf16.msra.mxu1 %v923_v24  ;;  %v960_v3 = vld [vmem:[%s1239_s5 + $0x20] sm:$0xff]   ;;  %v965_v8 = vld [vmem:[%s1239_s5 + $0xa8] sm:$0xff]   ;;  %v967_v10 = vld [vmem:[%s1239_s5 + $0xf0] sm:$0xff]  }
  0x16   :  { %365 = vmatpush1.bf16.msra.mxu0 %v914_v22  ;;  %325 = vmatprep.subr.bf16.mxu1 %v924_v25  ;;  %v961_v4 = vld [vmem:[%s1239_s5 + $0xa0] sm:$0xff]   ;;  %v968_v11 = vld [vmem:[%s1239_s5 + $0x30] sm:$0xff]   ;;  %v970_v13 = vld [vmem:[%s1239_s5 + $0x78] sm:$0xff]   ;;  %v141_v22 = vsub.s32 1, %v136_v18 }
  0x17   :  { %366 = vmatprep.subr.bf16.mxu0 %v922_v23  ;;  %v969_v12 = vld [vmem:[%s1239_s5 + $0xb0] sm:$0xff]   ;;  %v971_v14 = vld [vmem:[%s1239_s5 + $0xf8] sm:$0xff]   ;;  %v133_v21 = vld [vmem:[%s1241_s4] sm:$0xf]  ;;  %v149_v23 = vsub.s32 3, %v136_v18 }
  0x18   :  { %v972_v15 = vld [vmem:[%s1239_s5 + $0x38] sm:$0xff]   ;;  %v138_v24 = vrot.slane %v133_v21, %v137_v19  ;;  %v146_v25 = vrot.slane %v133_v21, %v145_v20 }
  0x19   :  { %326 = vmatpush1.bf16.msra.mxu1 %v929_v28  ;;  %v973_v16 = vld [vmem:[%s1239_s5 + $0xb8] sm:$0xff]  }
  0x1a   :  { %367 = vmatpush1.bf16.msra.mxu0 %v920_v26  ;;  %327 = vmatprep.subr.bf16.mxu1 %v930_v30  ;;  %v142_v26 = vrot.slane %v133_v21, %v141_v22 }
  0x1b   :  { %368 = vmatprep.subr.bf16.mxu0 %v928_v27  ;;  %v150_v27 = vrot.slane %v133_v21, %v149_v23 }
  0x1d   :  { %328 = vmatpush1.bf16.msra.mxu1 %v935_v33 }
  0x1e   :  { %369 = vmatpush1.bf16.msra.mxu0 %v926_v29  ;;  %329 = vmatprep.subr.bf16.mxu1 %v936_v34 }
  0x1f   :  { %370 = vmatprep.subr.bf16.mxu0 %v934_v31 }
  0x21   :  { %330 = vmatpush1.bf16.msra.mxu1 %v941_v37 }
  0x22   :  { %371 = vmatpush1.bf16.msra.mxu0 %v932_v32  ;;  %837 = vmatprep.subr.bf16.mxu1 %v942_v39 }
  0x23   :  { %372 = vmatprep.subr.bf16.mxu0 %v940_v35 }
  0x26   :  { %373 = vmatpush1.bf16.msra.mxu0 %v938_v36 }
  0x27   :  { %859 = vmatprep.subr.bf16.mxu0 %v943_v40 }
  0xdc   :  { %v91_v42 = vpop.f32.mrb[0].mxu0 }
  0xdd   :  { %v92_v43 = vadd.f32 %v765_v41, %v91_v42  ;;  %v887_v44 = vpop.f32.mrb[1].mxu0 }
  0xde   :  { %v94_v45 = vpop.f32.mrb[2].mxu0 }
  0xdf   :  { %v95_v46 = vadd.f32 %v765_v41, %v94_v45  ;;  %v888_v47 = vpop.f32.mrb[3].mxu0  ;;  %v98_v48 = vmax.f32 %v92_v43, 0.0 }
  0xe1   :  { %v99_v49 = vmax.f32 %v95_v46, 0.0 }
  0xe3   :  { %v100_v52 = vpack.c.bf16 %v99_v49, %v98_v48 }
  0xe5   :  { %348 = vmatmul.mubr.bf16.vlgmr.msra.gmra.mrb[0].mxu1 %v100_v52  ;;  %391 = vmatmul.mubr.bf16.vlgmr.msra.gmra.mrb[4].mxu0 %v100_v52 }
  0xe6   :  { %838 = vmatpush3.bf16.msra.mxu1 %v944_v50  ;;  %860 = vmatpush3.bf16.msra.mxu0 %v945_v51 }
  0xe7   :  { %839 = vmatprep.subr.bf16.mxu1 %v946_v53  ;;  %861 = vmatprep.subr.bf16.mxu0 %v947_v54 }
  0xea   :  { %840 = vmatpush3.bf16.msra.mxu1 %v948_v55  ;;  %862 = vmatpush3.bf16.msra.mxu0 %v949_v56 }
  0xeb   :  { %841 = vmatprep.subr.bf16.mxu1 %v950_v57  ;;  %863 = vmatprep.subr.bf16.mxu0 %v951_v58  ;;  %v801_v58 = vld [vmem:[%s1242_s6] ss:$0 sm:$0xff] }
  0xee   :  { %842 = vmatpush3.bf16.msra.mxu1 %v952_v59  ;;  %864 = vmatpush3.bf16.msra.mxu0 %v953_v60 }
  0xef   :  { %843 = vmatprep.subr.bf16.mxu1 %v954_v61  ;;  %865 = vmatprep.subr.bf16.mxu0 %v955_v62 }
  0xf2   :  { %844 = vmatpush3.bf16.msra.mxu1 %v956_v63  ;;  %866 = vmatpush3.bf16.msra.mxu0 %v957_v0 }
  0xf3   :  { %845 = vmatprep.subr.bf16.mxu1 %v958_v1  ;;  %867 = vmatprep.subr.bf16.mxu0 %v959_v2 }
  0xf6   :  { %846 = vmatpush3.bf16.msra.mxu1 %v960_v3  ;;  %868 = vmatpush3.bf16.msra.mxu0 %v961_v4 }
  0xf7   :  { %847 = vmatprep.subr.bf16.mxu1 %v962_v5  ;;  %869 = vmatprep.subr.bf16.mxu0 %v963_v6 }
  0xfa   :  { %848 = vmatpush3.bf16.msra.mxu1 %v964_v7  ;;  %870 = vmatpush3.bf16.msra.mxu0 %v965_v8 }
  0xfb   :  { %849 = vmatprep.subr.bf16.mxu1 %v966_v9  ;;  %871 = vmatprep.subr.bf16.mxu0 %v967_v10 }
  0xfe   :  { %850 = vmatpush3.bf16.msra.mxu1 %v968_v11  ;;  %872 = vmatpush3.bf16.msra.mxu0 %v969_v12 }
  0xff   :  { %851 = vmatprep.subr.bf16.mxu1 %v970_v13  ;;  %873 = vmatprep.subr.bf16.mxu0 %v971_v14 }
 0x102   :  { %852 = vmatpush3.bf16.msra.mxu1 %v972_v15  ;;  %874 = vmatpush3.bf16.msra.mxu0 %v973_v16 }
 0x1b8   :  { %v349_v28 = vpop.f32.mrb[0].mxu1  ;;  %v392_v29 = vpop.f32.mrb[4].mxu0 }
 0x1b9   :  { %v350_v30 = vadd.f32 %v349_v28, %v138_v24  ;;  %v393_v31 = vadd.f32 %v392_v29, %v146_v25  ;;  %v351_v32 = vpop.f32.mrb[1].mxu1  ;;  %v394_v33 = vpop.f32.mrb[5].mxu0 }
 0x1ba   :  { %v352_v34 = vadd.f32 %v351_v32, %v142_v26  ;;  %v395_v35 = vadd.f32 %v394_v33, %v150_v27  ;;  %v353_v36 = vpop.f32.mrb[2].mxu1  ;;  %v396_v37 = vpop.f32.mrb[6].mxu0 }
 0x1bb   :  { %v354_v38 = vadd.f32 %v353_v36, %v138_v24  ;;  %v397_v39 = vadd.f32 %v396_v37, %v146_v25  ;;  %v355_v40 = vpop.f32.mrb[3].mxu1  ;;  %v398_v41 = vpop.f32.mrb[7].mxu0  ;;  %v401_v44 = vmax.f32 %v350_v30, 0.0  ;;  %v403_v45 = vmax.f32 %v393_v31, 0.0 }
 0x1bc   :  { %v356_v42 = vadd.f32 %v355_v40, %v142_v26  ;;  %v399_v43 = vadd.f32 %v398_v41, %v150_v27  ;;  %v402_v48 = vmax.f32 %v352_v34, 0.0  ;;  %v404_v49 = vmax.f32 %v395_v35, 0.0 }
 0x1bd   :  { %v405_v46 = vmax.f32 %v354_v38, 0.0  ;;  %v407_v47 = vmax.f32 %v397_v39, 0.0 }
 0x1be   :  { %v406_v50 = vmax.f32 %v356_v42, 0.0  ;;  %v408_v51 = vmax.f32 %v399_v43, 0.0 }
 0x1bf   :  { %v409_v52 = vpack.c.bf16 %v405_v46, %v401_v44  ;;  %v411_v53 = vpack.c.bf16 %v407_v47, %v403_v45 }
 0x1c0   :  { %v410_v54 = vpack.c.bf16 %v406_v50, %v402_v48  ;;  %v412_v55 = vpack.c.bf16 %v408_v51, %v404_v49 }
 0x1c2   :  { %708 = vmatprep.mubr.bf16.mxu1 %v410_v54  ;;  %749 = vmatprep.mubr.bf16.mxu0 %v412_v55 }
 0x1c3   :  { %709 = vmatmul.mubr.bf16.vlgmr.msra.gmra.mrb[4].mxu1 %v409_v52  ;;  %750 = vmatmul.mubr.bf16.vlgmr.msra.gmra.mrb[8].mxu0 %v411_v53 }
 0x296   :  { %v853_v56 = vpop.f32.mrb[4].mxu1  ;;  %v875_v57 = vpop.f32.mrb[8].mxu0 }
 0x297   :  { %v854_v59 = vpop.f32.mrb[5].mxu1  ;;  %v876_v60 = vpop.f32.mrb[9].mxu0 }
 0x298   :  { %v855_v61 = vadd.f32 %v854_v59, %v853_v56  ;;  %v877_v62 = vadd.f32 %v876_v60, %v875_v57  ;;  %v856_v63 = vpop.f32.mrb[6].mxu1  ;;  %v878_v0 = vpop.f32.mrb[10].mxu0 }
 0x299   :  { %v857_v1 = vpop.f32.mrb[7].mxu1  ;;  %v879_v2 = vpop.f32.mrb[11].mxu0 }
 0x29a   :  { %v711_v3 = vadd.f32 %v855_v61, %v801_v58  ;;  %v858_v4 = vadd.f32 %v857_v1, %v856_v63  ;;  %v880_v5 = vadd.f32 %v879_v2, %v878_v0 }
 0x29c   :  { %v752_v6 = vadd.f32 %v877_v62, %v711_v3  ;;  %v714_v7 = vadd.f32 %v858_v4, %v801_v58 }
 0x29e   :  { %759 = vst.msk [vmem:[%s1243_s7] sm:$0xff] %vm758_vm2, %v752_v6  ;;  %v755_v8 = vadd.f32 %v880_v5, %v714_v7 }
 0x2a0   :  { %760 = vst.msk [vmem:[%s1243_s7 + $0x8] sm:$0xff] %vm758_vm2, %v755_v8 }

</bundles_post_ra>
